<compile_context>
chip_gen: v7x
topology: tpu7x:2x2x1
jax: 0.10.0
libtpu: 0.0.40
codegen_flags: <defaults>
</compile_context>

<pallas_src>
import jax
import jax.numpy as jnp
from jax.experimental import pallas as pl
from jax.experimental.pallas import tpu as pltpu


def fine_encoder_kernel(x_ref, w1_ref, b1_ref, w2_ref, b2_ref, o_ref):
    # Cast x to the matmul compute dtype inside the kernel (VPU work on a
    # VMEM-resident tile; avoids a standalone XLA convert pass over HBM).
    x = x_ref[...].astype(w1_ref.dtype)

    # Two MXU matmuls with f32 accumulation; biases / ReLU / normalize in f32.
    h1 = jnp.dot(x, w1_ref[...], preferred_element_type=jnp.float32) + b1_ref[...]
    h1 = jnp.maximum(h1, 0.0)

    h2 = (
        jnp.dot(h1.astype(w2_ref.dtype), w2_ref[...],
                preferred_element_type=jnp.float32)
        + b2_ref[...]
    )
    h2 = jnp.maximum(h2, 0.0)

    # F.normalize(h2, dim=1, eps=1e-12): h2 * rsqrt(max(||h2||^2, 1e-24))
    sq = jnp.sum(h2 * h2, axis=1, keepdims=True)
    inv = jax.lax.rsqrt(jnp.maximum(sq, 1e-24))
    o_ref[...] = (h2 * inv).astype(o_ref.dtype)


def _round_up(x, m):
    return ((x + m - 1) // m) * m


def _resident_spec(shape):
    """Constant-index BlockSpec for a VMEM-resident (never re-fetched) operand.

    Single-buffered when the installed Pallas supports pipeline_mode; falls
    back to the default spec otherwise (negligible at small D)."""
    index_map = lambda i: (0,) * len(shape)
    try:
        return pl.BlockSpec(shape, index_map, pipeline_mode=pl.Buffered(1))
    except TypeError:
        return pl.BlockSpec(shape, index_map)


def prepare_params(w1, b1, w2, b2, *, compute_dtype=jnp.bfloat16):
    """One-time (model-init) conversion of the weights to the MXU compute
    dtype. Biases stay f32 (added to the f32 accumulator). Do this once and
    keep the result; do not re-convert per forward call."""
    return (
        jnp.asarray(w1, compute_dtype),
        jnp.asarray(b1, jnp.float32),
        jnp.asarray(w2, jnp.float32).astype(compute_dtype),
        jnp.asarray(b2, jnp.float32),
    )


def _vmem_cap_bytes():
    # Generation-aware cap: ~80% of physical VMEM (≈51 MiB on v7x's 64 MiB,
    # ≈102 MiB on v5e/v6e's 128 MiB) leaves room for Mosaic internal scratch.
    try:
        cap = pltpu.get_tpu_info().vmem_capacity_bytes
    except Exception:  # conservative fallback if query is unavailable
        cap = 64 << 20
    return int(cap * 0.8)


def fine_encoder(x, w1, b1, w2, b2, *, block_b=1024, out_dtype=jnp.float32):
    """x: (B, in_dim); w1: (in_dim, D); b1: (1, D); w2: (D, D); b2: (1, D).

    Weight dtype (f32 or bf16) selects the MXU compute precision; use
    prepare_params() once at init for the bf16 path. Output is L2-normalized
    along dim=1 and written in `out_dtype` (bf16 is safe: |v| <= 1)."""
    B, in_dim = x.shape
    D = w1.shape[1]
    compute_itemsize = jnp.dtype(w1.dtype).itemsize
    out_itemsize = jnp.dtype(out_dtype).itemsize

    # Batch tile: bf16 x packs [16,128] per vreg -> align rows to 16; f32 -> 8.
    # Target ~4 grid steps (>=2 so v7x's two TCs both get work and the x/out
    # DMAs pipeline), with a 256-row floor to amortize per-step overhead.
    align = 16 if compute_itemsize < 4 else 8
    b_pad = _round_up(B, align)
    tb = _round_up(max(1, (B + 3) // 4), align)
    tb = max(tb, min(256, b_pad))
    TB = min(tb, block_b, b_pad)
    grid = (pl.cdiv(B, TB),)

    # VMEM budget: double-buffered x/out tiles + single-buffered weights +
    # f32 intermediates (h1, h2, bf16 x copy), 2x headroom, generation-aware cap.
    bytes_tiles = 2 * (TB * in_dim * x.dtype.itemsize + TB * D * out_itemsize)
    bytes_weights = (in_dim * D + D * D) * compute_itemsize + 2 * D * 4
    bytes_inter = 2 * TB * D * 4 + TB * in_dim * compute_itemsize
    vmem_bytes = int(min(_vmem_cap_bytes(),
                         max(16 << 20, 2 * (bytes_tiles + bytes_weights + bytes_inter))))

    cost = pl.CostEstimate(
        flops=2 * B * (in_dim * D + D * D) + 4 * B * D,
        transcendentals=B,  # one rsqrt per row
        bytes_accessed=(B * in_dim * x.dtype.itemsize
                        + (in_dim * D + D * D) * compute_itemsize
                        + 2 * D * 4
                        + B * D * out_itemsize),
    )

    return pl.pallas_call(
        fine_encoder_kernel,
        out_shape=jax.ShapeDtypeStruct((B, D), out_dtype),
        grid=grid,
        in_specs=[
            pl.BlockSpec((TB, in_dim), lambda i: (i, 0)),   # x: tiled over batch
            _resident_spec((in_dim, D)),                    # w1: resident
            _resident_spec((1, D)),                         # b1: resident
            _resident_spec((D, D)),                         # w2: resident
            _resident_spec((1, D)),                         # b2: resident
        ],
        out_specs=pl.BlockSpec((TB, D), lambda i: (i, 0)),
        compiler_params=pltpu.CompilerParams(
            dimension_semantics=("parallel",),
            vmem_limit_bytes=vmem_bytes,
        ),
        cost_estimate=cost,
    )(x, w1, b1, w2, b2)


def reference(x, w1, b1, w2, b2):
    h = jnp.maximum(x @ w1 + b1, 0.0)
    h = jnp.maximum(h @ w2 + b2, 0.0)
    n = jnp.maximum(jnp.linalg.norm(h, axis=1, keepdims=True), 1e-12)
    return h / n


if __name__ == "__main__":
    # Small shapes consistent with the module: in_dim = L*Fcnt = 32, D = 128.
    B, in_dim, D = 8, 32, 128

    key = jax.random.PRNGKey(0)
    kx, k1, k2, k3, k4 = jax.random.split(key, 5)

    x = jax.random.normal(kx, (B, in_dim), dtype=jnp.float32)

    # Deterministic parameter init (uniform, scaled like PyTorch Linear defaults).
    bound1 = 1.0 / (in_dim ** 0.5)
    bound2 = 1.0 / (D ** 0.5)
    w1 = jax.random.uniform(k1, (in_dim, D), jnp.float32, -bound1, bound1)
    b1 = jax.random.uniform(k2, (1, D), jnp.float32, -bound1, bound1)
    w2 = jax.random.uniform(k3, (D, D), jnp.float32, -bound2, bound2)
    b2 = jax.random.uniform(k4, (1, D), jnp.float32, -bound2, bound2)

    ref = reference(x, w1, b1, w2, b2)

    # f32 compute path (weights passed as-is): tight tolerance vs. reference.
    out = jax.block_until_ready(fine_encoder(x, w1, b1, w2, b2))
    assert out.shape == (B, D) and out.dtype == jnp.float32
    assert jnp.allclose(out, ref, atol=1e-5, rtol=1e-5)

    # bf16 MXU-input path: weights converted ONCE (init-time), x cast in-kernel,
    # output written in bf16 (dominant HBM write halved). Looser tolerance.
    w1b, b1b, w2b, b2b = jax.block_until_ready(
        prepare_params(w1, b1, w2, b2, compute_dtype=jnp.bfloat16))
    out_bf16 = jax.block_until_ready(
        fine_encoder(x, w1b, b1b, w2b, b2b, out_dtype=jnp.bfloat16))
    assert out_bf16.shape == (B, D) and out_bf16.dtype == jnp.bfloat16
    assert jnp.allclose(out_bf16.astype(jnp.float32), ref, atol=2e-2, rtol=2e-2)

    print("KERNEL_OK")
</pallas_src>

<mosaic_0001>
module attributes {stable_mosaic.version = 11 : i64} {
  func.func @fine_encoder_kernel(%arg0: i32, %arg1: memref<8x32xf32, #tpu.memory_space<vmem>>, %arg2: memref<32x128xf32, #tpu.memory_space<vmem>>, %arg3: memref<1x128xf32, #tpu.memory_space<vmem>>, %arg4: memref<128x128xf32, #tpu.memory_space<vmem>>, %arg5: memref<1x128xf32, #tpu.memory_space<vmem>>, %arg6: memref<8x128xf32, #tpu.memory_space<vmem>>) attributes {dimension_semantics = [#tpu.dimension_semantics<parallel>], iteration_bounds = array<i64: 1>, scalar_prefetch = 0 : i64, scratch_operands = 0 : i64, tpu.core_type = #tpu.core_type<tc>, window_params = [{transform_indices = @transform_0, window_bounds = array<i64: 8, 32>}, {pipeline_mode = #tpu.pipeline_mode<synchronous>, transform_indices = @transform_1, window_bounds = array<i64: 32, 128>}, {pipeline_mode = #tpu.pipeline_mode<synchronous>, transform_indices = @transform_2, window_bounds = array<i64: 1, 128>}, {pipeline_mode = #tpu.pipeline_mode<synchronous>, transform_indices = @transform_3, window_bounds = array<i64: 128, 128>}, {pipeline_mode = #tpu.pipeline_mode<synchronous>, transform_indices = @transform_4, window_bounds = array<i64: 1, 128>}, {transform_indices = @transform_5, window_bounds = array<i64: 8, 128>}]} {
    %c0 = arith.constant 0 : index
    %c0_0 = arith.constant 0 : index
    %0 = vector.load %arg1[%c0, %c0_0] : memref<8x32xf32, #tpu.memory_space<vmem>>, vector<8x32xf32>
    %c0_1 = arith.constant 0 : index
    %c0_2 = arith.constant 0 : index
    %1 = vector.load %arg2[%c0_1, %c0_2] : memref<32x128xf32, #tpu.memory_space<vmem>>, vector<32x128xf32>
    %cst = arith.constant dense<0.000000e+00> : vector<8x128xf32>
    %2 = tpu.matmul %0, %1, %cst {dimension_numbers = #tpu.dot_dimension_numbers<[1], [0], [0], [1], [0, 0, 1, 1], [], []>} : vector<8x32xf32>, vector<32x128xf32>, vector<8x128xf32> -> vector<8x128xf32>
    %c0_3 = arith.constant 0 : index
    %c0_4 = arith.constant 0 : index
    %3 = vector.load %arg3[%c0_3, %c0_4] : memref<1x128xf32, #tpu.memory_space<vmem>>, vector<1x128xf32>
    %4 = vector.broadcast %3 : vector<1x128xf32> to vector<8x128xf32>
    %5 = arith.addf %2, %4 : vector<8x128xf32>
    %cst_5 = arith.constant 0.000000e+00 : f32
    %6 = vector.broadcast %cst_5 : f32 to vector<8x128xf32>
    %7 = arith.maximumf %5, %6 : vector<8x128xf32>
    %c0_6 = arith.constant 0 : index
    %c0_7 = arith.constant 0 : index
    %8 = vector.load %arg4[%c0_6, %c0_7] : memref<128x128xf32, #tpu.memory_space<vmem>>, vector<128x128xf32>
    %cst_8 = arith.constant dense<0.000000e+00> : vector<8x128xf32>
    %9 = tpu.matmul %7, %8, %cst_8 {dimension_numbers = #tpu.dot_dimension_numbers<[1], [0], [0], [1], [0, 0, 1, 1], [], []>} : vector<8x128xf32>, vector<128x128xf32>, vector<8x128xf32> -> vector<8x128xf32>
    %c0_9 = arith.constant 0 : index
    %c0_10 = arith.constant 0 : index
    %10 = vector.load %arg5[%c0_9, %c0_10] : memref<1x128xf32, #tpu.memory_space<vmem>>, vector<1x128xf32>
    %11 = vector.broadcast %10 : vector<1x128xf32> to vector<8x128xf32>
    %12 = arith.addf %9, %11 : vector<8x128xf32>
    %cst_11 = arith.constant 0.000000e+00 : f32
    %13 = vector.broadcast %cst_11 : f32 to vector<8x128xf32>
    %14 = arith.maximumf %12, %13 : vector<8x128xf32>
    %15 = arith.mulf %14, %14 : vector<8x128xf32>
    %cst_12 = arith.constant dense<0.000000e+00> : vector<8xf32>
    %16 = vector.multi_reduction <add>, %15, %cst_12 [1] : vector<8x128xf32> to vector<8xf32>
    %17 = vector.shape_cast %16 : vector<8xf32> to vector<8x1xf32>
    %cst_13 = arith.constant 1.000000e-24 : f32
    %18 = vector.broadcast %cst_13 : f32 to vector<8x1xf32>
    %19 = arith.maximumf %17, %18 : vector<8x1xf32>
    %20 = math.rsqrt %19 : vector<8x1xf32>
    %21 = vector.broadcast %20 : vector<8x1xf32> to vector<8x128xf32>
    %22 = arith.mulf %14, %21 : vector<8x128xf32>
    %c0_14 = arith.constant 0 : index
    %c0_15 = arith.constant 0 : index
    %23 = vector.load %arg6[%c0_14, %c0_15] : memref<8x128xf32, #tpu.memory_space<vmem>>, vector<8x128xf32>
    tpu.vector_store %arg6[%c0_14, %c0_15], %22 {strides = array<i32>} : memref<8x128xf32, #tpu.memory_space<vmem>>, vector<8x128xf32>,
    return
  }
  func.func @transform_0(%arg0: i32) -> (i32, i32) {
    %c0_i32 = arith.constant 0 : i32
    %c0_i32_0 = arith.constant 0 : i32
    return %arg0, %c0_i32 : i32, i32
  }
  func.func @transform_1(%arg0: i32) -> (i32, i32) {
    %c0_i32 = arith.constant 0 : i32
    %c0_i32_0 = arith.constant 0 : i32
    %c0_i32_1 = arith.constant 0 : i32
    return %c0_i32, %c0_i32_0 : i32, i32
  }
  func.func @transform_2(%arg0: i32) -> (i32, i32) {
    %c0_i32 = arith.constant 0 : i32
    %c0_i32_0 = arith.constant 0 : i32
    %c0_i32_1 = arith.constant 0 : i32
    return %c0_i32, %c0_i32_0 : i32, i32
  }
  func.func @transform_3(%arg0: i32) -> (i32, i32) {
    %c0_i32 = arith.constant 0 : i32
    %c0_i32_0 = arith.constant 0 : i32
    %c0_i32_1 = arith.constant 0 : i32
    return %c0_i32, %c0_i32_0 : i32, i32
  }
  func.func @transform_4(%arg0: i32) -> (i32, i32) {
    %c0_i32 = arith.constant 0 : i32
    %c0_i32_0 = arith.constant 0 : i32
    %c0_i32_1 = arith.constant 0 : i32
    return %c0_i32, %c0_i32_0 : i32, i32
  }
  func.func @transform_5(%arg0: i32) -> (i32, i32) {
    %c0_i32 = arith.constant 0 : i32
    %c0_i32_0 = arith.constant 0 : i32
    return %arg0, %c0_i32 : i32, i32
  }
}

</mosaic_0001>

<bundles_post_ra>
// kernel: tpu_custom_call.1
= control target key start
LH: loop header
LB: loop body
LE: loop exit
PB: predicated region body
PF: predicated region fallthrough
CT: control target
= control target key end

     0   :  { %10 = vsyncpa [#allocation3], 0  ;;  %s569_s0 = inlined_call_operand.hbm [shape: f32[8,32], index: 0, kind: input, shape index: {}]   ;;  %s570_s1 = inlined_call_operand.hbm [shape: f32[32,128], index: 1, kind: input, shape index: {}]   ;;  %s571_s2 = inlined_call_operand.vmem [shape: f32[1,128], index: 2, kind: input, shape index: {}]   ;;  %s572_s3 = inlined_call_operand.hbm [shape: f32[128,128], index: 3, kind: input, shape index: {}]   ;;  %s573_s4 = inlined_call_operand.vmem [shape: f32[1,128], index: 4, kind: input, shape index: {}]   ;;  %s574_s5 = inlined_call_operand.hbm [shape: f32[8,128], index: 5, kind: output, shape index: {}]  }
   0x1   :  { %11 = vsyncpa [#allocation6], 0 }
   0x2   :  { %12 = vsyncpa [#allocation4], 0  ;;  %s470_s18 = smov [#allocation5]   ;;  %s376_s22 = scalar_lea.hbm %s570_s1, 512 }
   0x3   :  { %s28_s19 = sshll.u32 %s470_s18, 4  ;;  %p377_p0 = scmp.ne.s32.totalorder %s570_s1, %s376_s22  ;;  %s29_s19 = int_to_ptr.vmem [resolvable:$true] %s28_s19 }
   0x4   :  { %p380_p1 = scmp.lt.u32.totalorder %s376_s22, %s570_s1 }
   0x6   :  { %p382_p2 = pnand %p380_p1, %p377_p0 }
   0x8   :  { %385 = shalt.err (!%p382_p2)
}
   0x9   :  { %s386_s27 = scalar_lea.vmem %s29_s19, 512  ;;  %p391_p4 = scmp.lt.s32.totalorder %s29_s19, %s29_s19 }
   0xa   :  { %p387_p3 = scmp.ne.s32.totalorder %s29_s19, %s386_s27  ;;  %p392_p5 = scmp.lt.s32.totalorder %s386_s27, %s386_s27 }
   0xc   :  { %p393_p6 = por %p392_p5, %p391_p4 }
   0xe   :  { %p394_p7 = pnand %p393_p6, %p387_p3 }
  0x10   :  { %397 = shalt.err (!%p394_p7)
}
  0x11   :  { %s471_s28 = smov 128   ;;  %s472_s29 = smov 8  }
  0x12   :  { %34 = dma.hbm_to_vmem [thread:$0]  %s570_s1, 512, %s29_s19, [#allocation6], %s471_s28, %s471_s28, %s472_s29  }
  0x13   :  { %s473_s7 = smov [#allocation2]   ;;  %s474_s9 = smov [#allocation7]  }
  0x14   :  { %s19_s8 = sshll.u32 %s473_s7, 4  ;;  %s42_s10 = sshll.u32 %s474_s9, 4  ;;  %s20_s8 = int_to_ptr.vmem [resolvable:$true] %s19_s8  ;;  %s43_s10 = int_to_ptr.vmem [resolvable:$true] %s42_s10 }
  0x15   :  { %s398_s13 = scalar_lea.hbm %s569_s0, 128 }
  0x16   :  { %p399_p8 = scmp.ne.s32.totalorder %s569_s0, %s398_s13  ;;  %p402_p9 = scmp.lt.u32.totalorder %s398_s13, %s569_s0 }
  0x18   :  { %p404_p10 = pnand %p402_p9, %p399_p8 }
  0x1a   :  { %407 = shalt.err (!%p404_p10)
}
  0x1b   :  { %s408_s1 = scalar_lea.vmem %s20_s8, 128  ;;  %p413_p12 = scmp.lt.s32.totalorder %s20_s8, %s20_s8 }
  0x1c   :  { %p409_p11 = scmp.ne.s32.totalorder %s20_s8, %s408_s1  ;;  %p414_p13 = scmp.lt.s32.totalorder %s408_s1, %s408_s1 }
  0x1e   :  { %p415_p0 = por %p414_p13, %p413_p12 }
  0x20   :  { %p416_p1 = pnand %p415_p0, %p409_p11 }
  0x22   :  { %419 = shalt.err (!%p416_p1)
}
  0x23   :  { %22 = dma.hbm_to_vmem [thread:$0]  %s569_s0, 128, %s20_s8, [#allocation3]  }
  0x24   :  { %s420_s22 = scalar_lea.hbm %s572_s3, 2048 }
  0x25   :  { %p421_p2 = scmp.ne.s32.totalorder %s572_s3, %s420_s22  ;;  %p424_p3 = scmp.lt.u32.totalorder %s420_s22, %s572_s3 }
  0x27   :  { %p426_p4 = pnand %p424_p3, %p421_p2 }
  0x29   :  { %429 = shalt.err (!%p426_p4)
}
  0x2a   :  { %s430_s27 = scalar_lea.vmem %s43_s10, 2048  ;;  %p435_p6 = scmp.lt.s32.totalorder %s43_s10, %s43_s10 }
  0x2b   :  { %p431_p5 = scmp.ne.s32.totalorder %s43_s10, %s430_s27  ;;  %p436_p7 = scmp.lt.s32.totalorder %s430_s27, %s430_s27 }
  0x2d   :  { %p437_p8 = por %p436_p7, %p435_p6 }
  0x2f   :  { %p438_p9 = pnand %p437_p8, %p431_p5 }
  0x31   :  { %441 = shalt.err (!%p438_p9)
}
  0x32   :  { %48 = dma.hbm_to_vmem [thread:$0]  %s572_s3, 2048, %s43_s10, [#allocation6], %s471_s28, %s471_s28, %s472_s29  }
  0x33   :  { %464 = dma.done.wait [#allocation3], 128  }
  0x34   :  { %465 = vsyncadd [#allocation3], 4294967168 }
  0x35   :  { %466 = dma.done.wait [#allocation6], 2560  }
  0x36   :  { %467 = vsyncadd [#allocation6], 4294964736  ;;  %v475_v0 = vmov 0.0|0.0   ;;  %vm476_vm0 = vmmov 0   ;;  %v477_v1 = vmov 0.0   ;;  %v61_v2 = vld [vmem:[#allocation5] sm:$0xff] }
  0x37   :  { %335 = vmatprep.subr.bf16.mxu0 %v475_v0  ;;  %297 = vmatprep.mubr.msk.f32.mxu0 %vm476_vm0, %v477_v1  ;;  %v62_v3 = vld [vmem:[#allocation5 + $0x8] sm:$0xff]  ;;  %v63_v4 = vld [vmem:[#allocation5 + $0x10] sm:$0xff]  ;;  %v64_v6 = vld [vmem:[#allocation5 + $0x18] sm:$0xff]  ;;  %vm72_vm1 = vcmask 261120   ;;  %s478_s7 = smov [#allocation8]  }
  0x38   :  { %341 = vmatprep.subr.bf16.mxu1 %v475_v0  ;;  %332 = vmatprep.mubr.msk.f32.mxu1 %vm476_vm0, %v477_v1  ;;  %v336_v5 = vpack.c.bf16 %v62_v3, %v61_v2  ;;  %v147_v7 = vld [vmem:[#allocation7] sm:$0xff]  ;;  %v148_v8 = vld [vmem:[#allocation7 + $0x8] sm:$0xff]  ;;  %v149_v9 = vld [vmem:[#allocation7 + $0x10] sm:$0xff]  ;;  %v339_v11 = vpack.c.bf16 %v64_v6, %v63_v4 }
  0x39   :  { %v150_v10 = vld [vmem:[#allocation7 + $0x18] sm:$0xff]  ;;  %v342_v12 = vpack.c.bf16 %v148_v8, %v147_v7  ;;  %v151_v14 = vld [vmem:[#allocation7 + $0x20] sm:$0xff]  ;;  %v152_v15 = vld [vmem:[#allocation7 + $0x28] sm:$0xff] }
  0x3a   :  { %337 = vmatpush3.bf16.msra.mxu0 %v336_v5  ;;  %v345_v13 = vpack.c.bf16 %v150_v10, %v149_v9  ;;  %v60_v16 = vld [vmem:[#allocation2] sm:$0xff]  ;;  %v348_v17 = vpack.c.bf16 %v152_v15, %v151_v14  ;;  %v153_v18 = vld [vmem:[#allocation7 + $0x30] sm:$0xff]  ;;  %v155_v21 = vld [vmem:[#allocation7 + $0x40] sm:$0xff] }
  0x3b   :  { %338 = vmatprep.subr.bf16.mxu0 %v475_v0  ;;  %343 = vmatpush3.bf16.msra.mxu1 %v342_v12  ;;  %v154_v19 = vld [vmem:[#allocation7 + $0x38] sm:$0xff]  ;;  %v156_v22 = vld [vmem:[#allocation7 + $0x48] sm:$0xff]  ;;  %v157_v24 = vld [vmem:[#allocation7 + $0x50] sm:$0xff] }
  0x3c   :  { %344 = vmatprep.subr.bf16.mxu1 %v475_v0  ;;  %v351_v20 = vpack.c.bf16 %v154_v19, %v153_v18  ;;  %v354_v23 = vpack.c.bf16 %v156_v22, %v155_v21  ;;  %v158_v25 = vld [vmem:[#allocation7 + $0x58] sm:$0xff]  ;;  %v159_v27 = vld [vmem:[#allocation7 + $0x60] sm:$0xff]  ;;  %v160_v28 = vld [vmem:[#allocation7 + $0x68] sm:$0xff] }
  0x3d   :  { %v357_v26 = vpack.c.bf16 %v158_v25, %v157_v24  ;;  %v360_v29 = vpack.c.bf16 %v160_v28, %v159_v27  ;;  %v161_v30 = vld [vmem:[#allocation7 + $0x70] sm:$0xff]  ;;  %v162_v31 = vld [vmem:[#allocation7 + $0x78] sm:$0xff] }
  0x3e   :  { %340 = vmatpush3.bf16.msra.mxu0 %v339_v11  ;;  %v363_v32 = vpack.c.bf16 %v162_v31, %v161_v30  ;;  %v264_v33 = vld [vmem:[%s571_s2] ss:$0 sm:$0xff]  ;;  %s254_s2 = sshll.u32 %s478_s7, 4  ;;  %s255_s2 = int_to_ptr.vmem [resolvable:$true] %s254_s2 }
  0x3f   :  { %346 = vmatpush3.bf16.msra.mxu1 %v345_v13  ;;  %v266_v38 = vld [vmem:[%s573_s4] ss:$0 sm:$0xff]  ;;  %s442_s8 = scalar_lea.vmem %s255_s2, 128  ;;  %p447_p11 = scmp.lt.s32.totalorder %s255_s2, %s255_s2 }
  0x40   :  { %347 = vmatprep.subr.bf16.mxu1 %v475_v0  ;;  %p443_p10 = scmp.ne.s32.totalorder %s255_s2, %s442_s8  ;;  %p448_p12 = scmp.lt.s32.totalorder %s442_s8, %s442_s8 }
  0x41   :  { %298 = vmatmul.mubr.msk.f32.vlgmr.msra.gmra.mrb[0].mxu0 %vm72_vm1, %v60_v16 }
  0x42   :  { %p449_p13 = por %p448_p12, %p447_p11 }
  0x43   :  { %349 = vmatpush3.bf16.msra.mxu1 %v348_v17 }
  0x44   :  { %350 = vmatprep.subr.bf16.mxu1 %v475_v0  ;;  %p450_p0 = pnand %p449_p13, %p443_p10 }
  0x47   :  { %352 = vmatpush3.bf16.msra.mxu1 %v351_v20 }
  0x48   :  { %353 = vmatprep.subr.bf16.mxu1 %v475_v0 }
  0x4b   :  { %355 = vmatpush3.bf16.msra.mxu1 %v354_v23 }
  0x4c   :  { %356 = vmatprep.subr.bf16.mxu1 %v475_v0 }
  0x4f   :  { %358 = vmatpush3.bf16.msra.mxu1 %v357_v26 }
  0x50   :  { %359 = vmatprep.subr.bf16.mxu1 %v475_v0 }
  0x53   :  { %361 = vmatpush3.bf16.msra.mxu1 %v360_v29 }
  0x54   :  { %362 = vmatprep.subr.bf16.mxu1 %v475_v0 }
  0x57   :  { %364 = vmatpush3.bf16.msra.mxu1 %v363_v32 }
 0x114   :  { %v142_v34 = vpop.f32.mrb[0].mxu0 }
 0x115   :  { %v143_v35 = vadd.f32 %v264_v33, %v142_v34  ;;  %v299_v36 = vpop.f32.mrb[1].mxu0 }
 0x117   :  { %v146_v37 = vmax.f32 %v143_v35, 0.0 }
 0x119   :  { %333 = vmatmul.mubr.f32.vlgmr.msra.gmra.mrb[0].mxu1 %v146_v37 }
 0x1ec   :  { %v236_v39 = vpop.f32.mrb[0].mxu1 }
 0x1ed   :  { %v237_v40 = vadd.f32 %v266_v38, %v236_v39  ;;  %v334_v41 = vpop.f32.mrb[1].mxu1 }
 0x1ef   :  { %v240_v42 = vmax.f32 %v237_v40, 0.0 }
 0x1f1   :  { %v241_v43 = vmul.f32 %v240_v42, %v240_v42 }
 0x1f3   :  { %242 = vadd.xlane.f32.xlu0 %v241_v43 }
 0x280   :  { %v243_v44 = vpop.xlane.xlu0 %242 }
 0x281   :  { %v244_v45 = vmax.f32 %v243_v44, 1e-24 }
 0x283   :  { %374 = vrsqrt.f32 %v244_v45 }
 0x28d   :  { %v375_v46 = vpop.eup %374 }
 0x28e   :  { %v246_v47 = vmul.f32 %v375_v46, %v240_v42 }
 0x290   :  { %247 = vst [vmem:[#allocation8] sm:$0xff] %v246_v47 }
 0x291   :  { %453 = shalt.err (!%p450_p0)
}
 0x292   :  { %s454_s10 = scalar_lea.hbm %s574_s5, 128 }
 0x293   :  { %p455_p1 = scmp.ne.s32.totalorder %s574_s5, %s454_s10  ;;  %p458_p2 = scmp.lt.u32.totalorder %s454_s10, %s574_s5 }
 0x295   :  { %p460_p3 = pnand %p458_p2, %p455_p1 }
 0x297   :  { %463 = shalt.err (!%p460_p3)
}
 0x298   :  { %257 = dma.vmem_to_hbm [thread:$0]  %s255_s2, 128, %s574_s5, [#allocation4]  }
 0x299   :  { %468 = dma.done.wait [#allocation4], 128  }
 0x29a   :  { %469 = vsyncadd [#allocation4], 4294967168 }
 0x29b   :  { %261 = vsyncpa [#allocation3], 1 }
 0x29c   :  { %262 = vsyncpa [#allocation6], 1 }
 0x29d   :  { %263 = vsyncpa [#allocation4], 1 }

</bundles_post_ra>
